<compile_context>
chip_gen: v5e
topology: v5e:2x2
jax: 0.10.0
libtpu: 0.0.40
codegen_flags: <defaults>
</compile_context>

<pallas_src>
import functools
import math

import jax
import jax.numpy as jnp
from jax.experimental import pallas as pl
from jax.experimental.pallas import tpu as pltpu

LANE = 128


def _round_up(x, m):
    return (x + m - 1) // m * m


def _pad2d(x, rows, cols):
    return jnp.pad(x, ((0, rows - x.shape[0]), (0, cols - x.shape[1])))


# ----------------------------- Pallas kernel --------------------------------


def sage_layer_kernel(a_ref, x_ref, xs_ref, wl_ref, bl_ref, wr_ref, o_ref,
                      acc_ref, *, mode, d_out_valid):
    """One SAGEConv layer: K-tiled mean aggregation + fused epilogue.

    Grid = (row_tiles, k_tiles); row axis parallel, k axis arbitrary.
      a_ref  : (tm, tk)        bf16 tile of mean-normalized adjacency
      x_ref  : (tk, Din_p)     bf16 tile of node features (aggregation operand)
      xs_ref : (tm, Din_p)     bf16 tile of node features (self term, row tile)
      wl_ref : (Din_p, Dout_p) bf16  lin_l.weight.T (applied to aggregated feats)
      bl_ref : (1, Dout_p)     f32   lin_l bias
      wr_ref : (Din_p, Dout_p) bf16  lin_r.weight.T (applied to self feats)
      o_ref  : (tm, Dout_p)
      acc_ref: (tm, Din_p)     f32 scratch accumulator (persists over k)
    mode: "relu" (hidden layers), "log_softmax" (last layer, emb=False),
          "none" (last layer, emb=True).
    """
    k = pl.program_id(1)
    nk = pl.num_programs(1)

    @pl.when(k == 0)
    def _():
        acc_ref[...] = jnp.zeros_like(acc_ref)

    # K-reduction of the mean-neighbor aggregation: acc += A[i, k] @ X[k].
    acc_ref[...] += jnp.dot(a_ref[...], x_ref[...],
                            preferred_element_type=jnp.float32)

    @pl.when(k == nk - 1)
    def _():
        # Epilogue: W_l / bias / W_r self-term applied once per row tile
        # (hoisted out of the K loop), then activation, all while the
        # accumulator is still hot in VMEM.
        neigh = acc_ref[...]
        out = jnp.dot(neigh.astype(jnp.bfloat16), wl_ref[...],
                      preferred_element_type=jnp.float32)
        out = out + bl_ref[...]
        out = out + jnp.dot(xs_ref[...], wr_ref[...],
                            preferred_element_type=jnp.float32)
        if mode == "relu":
            out = jnp.maximum(out, 0.0)
        elif mode == "log_softmax":
            # Mask padded output lanes so they don't corrupt the row-wise
            # normalization (exp(pad) would otherwise contribute).
            lane_ids = jax.lax.broadcasted_iota(jnp.int32, out.shape, 1)
            out = jnp.where(lane_ids < d_out_valid, out, jnp.float32(-1e30))
            m = jnp.max(out, axis=1, keepdims=True)
            z = out - m
            lse = jnp.log(jnp.sum(jnp.exp(z), axis=1, keepdims=True))
            out = z - lse
        # mode == "none": raw embeddings (emb=True).
        # TODO(synk): training-mode dropout would use pltpu.prng_seed /
        # pltpu.prng_random_bits here; eval-mode dropout is identity.
        o_ref[...] = out.astype(o_ref.dtype)


# ------------------------------ JAX wrappers ---------------------------------


def sage_layer(a_p, x_p, wl_p, bl_p, wr_p, *, mode, d_out_valid,
               tile_m, tile_k, out_dtype):
    n_p = a_p.shape[0]
    d_in_p = x_p.shape[1]
    d_out_p = wl_p.shape[1]
    grid = (n_p // tile_m, n_p // tile_k)

    kernel = functools.partial(sage_layer_kernel, mode=mode,
                               d_out_valid=d_out_valid)

    flops = 2 * n_p * n_p * d_in_p + 4 * n_p * d_in_p * d_out_p
    bytes_accessed = (n_p * n_p * a_p.dtype.itemsize
                      + 2 * n_p * d_in_p * x_p.dtype.itemsize
                      + 2 * d_in_p * d_out_p * wl_p.dtype.itemsize
                      + n_p * d_out_p * jnp.dtype(out_dtype).itemsize)
    transcendentals = n_p * d_out_p if mode == "log_softmax" else 0

    return pl.pallas_call(
        kernel,
        out_shape=jax.ShapeDtypeStruct((n_p, d_out_p), out_dtype),
        grid_spec=pltpu.PrefetchScalarGridSpec(
            num_scalar_prefetch=0,
            grid=grid,
            in_specs=[
                pl.BlockSpec((tile_m, tile_k), lambda i, k: (i, k)),    # A tile
                pl.BlockSpec((tile_k, d_in_p), lambda i, k: (k, 0)),    # X (agg)
                pl.BlockSpec((tile_m, d_in_p), lambda i, k: (i, 0)),    # X (self)
                pl.BlockSpec((d_in_p, d_out_p), lambda i, k: (0, 0)),   # W_l
                pl.BlockSpec((1, d_out_p), lambda i, k: (0, 0)),        # b_l
                pl.BlockSpec((d_in_p, d_out_p), lambda i, k: (0, 0)),   # W_r
            ],
            out_specs=pl.BlockSpec((tile_m, d_out_p), lambda i, k: (i, 0)),
            scratch_shapes=[pltpu.VMEM((tile_m, d_in_p), jnp.float32)],
        ),
        compiler_params=pltpu.CompilerParams(
            dimension_semantics=("parallel", "arbitrary"),
            vmem_limit_bytes=64 * 1024 * 1024,
        ),
        cost_estimate=pl.CostEstimate(
            flops=flops,
            transcendentals=transcendentals,
            bytes_accessed=bytes_accessed,
        ),
    )(a_p, x_p, x_p, wl_p, bl_p, wr_p)


def build_mean_adjacency(edge_index, num_nodes_padded):
    """Dense row-normalized adjacency (mean aggregation), padded, bf16."""
    src = edge_index[0]
    dst = edge_index[1]
    ones = jnp.ones(src.shape[0], dtype=jnp.float32)
    a = jnp.zeros((num_nodes_padded, num_nodes_padded), jnp.float32)
    a = a.at[dst, src].add(ones)
    deg = jnp.zeros((num_nodes_padded,), jnp.float32).at[dst].add(ones)
    a = a / jnp.maximum(deg, 1.0)[:, None]
    return a.astype(jnp.bfloat16)


def init_gnn_params(key, input_dim, hidden_dim, output_dim, num_layers):
    """Parameter init mimicking PyG SAGEConv (lin_l with bias, lin_r without)."""
    dims = []
    if num_layers == 1:
        dims.append((input_dim, output_dim))
    else:
        dims.append((input_dim, hidden_dim))
        for _ in range(num_layers - 2):
            dims.append((hidden_dim, hidden_dim))
        dims.append((hidden_dim, output_dim))

    params = []
    for (din, dout) in dims:
        key, k1, k2, k3 = jax.random.split(key, 4)
        bound = 1.0 / jnp.sqrt(jnp.float32(din))
        w_l = jax.random.uniform(k1, (din, dout), jnp.float32, -bound, bound)
        b_l = jax.random.uniform(k2, (1, dout), jnp.float32, -bound, bound)
        w_r = jax.random.uniform(k3, (din, dout), jnp.float32, -bound, bound)
        params.append((w_l, b_l, w_r))
    return params


def gnn_stack_forward(x, edge_index, params, *, emb=False,
                      tile_m=128, tile_k=128):
    """Full GNNStack forward. tile 128 suits small graphs / v5e;
    larger graphs on v6e/v7x benefit from tile 256/512 (sweep)."""
    n, _ = x.shape
    num_layers = len(params)
    d_out_final = params[-1][0].shape[1]

    n_p = _round_up(n, math.lcm(tile_m, tile_k))
    a_p = build_mean_adjacency(edge_index, n_p)          # [n_p, n_p] bf16
    d_in_p0 = _round_up(x.shape[1], LANE)
    x_p = _pad2d(x, n_p, d_in_p0).astype(jnp.bfloat16)   # activations in bf16

    for i, (w_l, b_l, w_r) in enumerate(params):
        din, dout = w_l.shape
        din_p, dout_p = _round_up(din, LANE), _round_up(dout, LANE)
        wl_p = _pad2d(w_l, din_p, dout_p).astype(jnp.bfloat16)
        wr_p = _pad2d(w_r, din_p, dout_p).astype(jnp.bfloat16)
        bl_p = _pad2d(b_l, 1, dout_p).astype(jnp.float32)

        last = i == num_layers - 1
        if not last:
            mode, out_dtype = "relu", jnp.bfloat16
        else:
            mode = "none" if emb else "log_softmax"
            out_dtype = jnp.float32

        x_p = sage_layer(a_p, x_p, wl_p, bl_p, wr_p, mode=mode,
                         d_out_valid=dout, tile_m=tile_m, tile_k=tile_k,
                         out_dtype=out_dtype)
        # dropout (p=dropout_rate) in eval mode is identity

    return x_p[:n, :d_out_final]


# Pure-JAX f32 reference for a sanity check (not part of the hot path).
def gnn_stack_reference(x, edge_index, params, emb=False):
    n = x.shape[0]
    src, dst = edge_index[0], edge_index[1]
    ones = jnp.ones(src.shape[0], jnp.float32)
    a = jnp.zeros((n, n), jnp.float32).at[dst, src].add(ones)
    deg = jnp.zeros((n,), jnp.float32).at[dst].add(ones)
    a = a / jnp.maximum(deg, 1.0)[:, None]
    h = x
    for i, (w_l, b_l, w_r) in enumerate(params):
        out = a @ h @ w_l + b_l + h @ w_r
        if i < len(params) - 1:
            out = jnp.maximum(out, 0.0)
        h = out
    return h if emb else jax.nn.log_softmax(h, axis=1)


# ----------------------------------- main ------------------------------------


if __name__ == "__main__":
    key = jax.random.PRNGKey(0)
    kx, ke, kp = jax.random.split(key, 3)

    num_nodes = 300          # pads to 384 -> 3x3 grid with 128 tiles
    input_dim = 16
    hidden_dim = 64
    output_dim = 10
    num_layers = 3
    num_edges = 1500

    x = jax.random.normal(kx, (num_nodes, input_dim), jnp.float32)
    edge_index = jax.random.randint(ke, (2, num_edges), 0, num_nodes, jnp.int32)

    params = init_gnn_params(kp, input_dim, hidden_dim, output_dim, num_layers)

    out = gnn_stack_forward(x, edge_index, params, emb=False)
    out = jax.block_until_ready(out)

    assert out.shape == (num_nodes, output_dim)
    assert bool(jnp.all(jnp.isfinite(out)))

    # Numerics: bf16 MXU operands vs f32 reference (documented tolerance).
    ref = gnn_stack_reference(x, edge_index, params, emb=False)
    max_abs_err = float(jnp.max(jnp.abs(out - ref)))
    assert max_abs_err < 0.35, f"max abs err {max_abs_err}"

    print("KERNEL_OK")
</pallas_src>

<mosaic_0001>
module attributes {stable_mosaic.version = 11 : i64} {
  func.func @sage_layer_kernel(%arg0: i32, %arg1: i32, %arg2: memref<128x128xbf16, #tpu.memory_space<vmem>>, %arg3: memref<128x128xbf16, #tpu.memory_space<vmem>>, %arg4: memref<128x128xbf16, #tpu.memory_space<vmem>>, %arg5: memref<128x128xbf16, #tpu.memory_space<vmem>>, %arg6: memref<1x128xf32, #tpu.memory_space<vmem>>, %arg7: memref<128x128xbf16, #tpu.memory_space<vmem>>, %arg8: memref<128x128xbf16, #tpu.memory_space<vmem>>, %arg9: memref<128x128xf32, #tpu.memory_space<vmem>>) attributes {dimension_semantics = [#tpu.dimension_semantics<parallel>, #tpu.dimension_semantics<arbitrary>], iteration_bounds = array<i64: 3, 3>, scalar_prefetch = 0 : i64, scratch_operands = 1 : i64, tpu.core_type = #tpu.core_type<tc>, window_params = [{transform_indices = @transform_0, window_bounds = array<i64: 128, 128>}, {transform_indices = @transform_1, window_bounds = array<i64: 128, 128>}, {transform_indices = @transform_2, window_bounds = array<i64: 128, 128>}, {pipeline_mode = #tpu.pipeline_mode<synchronous>, transform_indices = @transform_3, window_bounds = array<i64: 128, 128>}, {pipeline_mode = #tpu.pipeline_mode<synchronous>, transform_indices = @transform_4, window_bounds = array<i64: 1, 128>}, {pipeline_mode = #tpu.pipeline_mode<synchronous>, transform_indices = @transform_5, window_bounds = array<i64: 128, 128>}, {transform_indices = @transform_6, window_bounds = array<i64: 128, 128>}]} {
    %c0_i32 = arith.constant 0 : i32
    %0 = arith.cmpi eq, %arg1, %c0_i32 : i32
    %1 = arith.extui %0 : i1 to i32
    %c0_i32_0 = arith.constant 0 : i32
    %2 = arith.cmpi ne, %1, %c0_i32_0 : i32
    scf.if %2 {
      %cst_9 = arith.constant 0.000000e+00 : f32
      %12 = vector.broadcast %cst_9 : f32 to vector<128x128xf32>
      %c0_10 = arith.constant 0 : index
      %c0_11 = arith.constant 0 : index
      %13 = vector.load %arg9[%c0_10, %c0_11] : memref<128x128xf32, #tpu.memory_space<vmem>>, vector<128x128xf32>
      tpu.vector_store %arg9[%c0_10, %c0_11], %12 {strides = array<i32>} : memref<128x128xf32, #tpu.memory_space<vmem>>, vector<128x128xf32>,
    } else {
    }
    %c0 = arith.constant 0 : index
    %c0_1 = arith.constant 0 : index
    %3 = vector.load %arg9[%c0, %c0_1] : memref<128x128xf32, #tpu.memory_space<vmem>>, vector<128x128xf32>
    %c0_2 = arith.constant 0 : index
    %c0_3 = arith.constant 0 : index
    %4 = vector.load %arg2[%c0_2, %c0_3] : memref<128x128xbf16, #tpu.memory_space<vmem>>, vector<128x128xbf16>
    %c0_4 = arith.constant 0 : index
    %c0_5 = arith.constant 0 : index
    %5 = vector.load %arg3[%c0_4, %c0_5] : memref<128x128xbf16, #tpu.memory_space<vmem>>, vector<128x128xbf16>
    %cst = arith.constant dense<0.000000e+00> : vector<128x128xf32>
    %6 = tpu.matmul %4, %5, %cst {dimension_numbers = #tpu.dot_dimension_numbers<[1], [0], [0], [1], [0, 0, 1, 1], [], []>} : vector<128x128xbf16>, vector<128x128xbf16>, vector<128x128xf32> -> vector<128x128xf32>
    %7 = arith.addf %3, %6 : vector<128x128xf32>
    %c0_6 = arith.constant 0 : index
    %c0_7 = arith.constant 0 : index
    %8 = vector.load %arg9[%c0_6, %c0_7] : memref<128x128xf32, #tpu.memory_space<vmem>>, vector<128x128xf32>
    tpu.vector_store %arg9[%c0_6, %c0_7], %7 {strides = array<i32>} : memref<128x128xf32, #tpu.memory_space<vmem>>, vector<128x128xf32>,
    %c2_i32 = arith.constant 2 : i32
    %9 = arith.cmpi eq, %arg1, %c2_i32 : i32
    %10 = arith.extui %9 : i1 to i32
    %c0_i32_8 = arith.constant 0 : i32
    %11 = arith.cmpi ne, %10, %c0_i32_8 : i32
    scf.if %11 {
      %c0_9 = arith.constant 0 : index
      %c0_10 = arith.constant 0 : index
      %12 = vector.load %arg9[%c0_9, %c0_10] : memref<128x128xf32, #tpu.memory_space<vmem>>, vector<128x128xf32>
      %13 = arith.truncf %12 : vector<128x128xf32> to vector<128x128xbf16>
      %c0_11 = arith.constant 0 : index
      %c0_12 = arith.constant 0 : index
      %14 = vector.load %arg5[%c0_11, %c0_12] : memref<128x128xbf16, #tpu.memory_space<vmem>>, vector<128x128xbf16>
      %cst_13 = arith.constant dense<0.000000e+00> : vector<128x128xf32>
      %15 = tpu.matmul %13, %14, %cst_13 {dimension_numbers = #tpu.dot_dimension_numbers<[1], [0], [0], [1], [0, 0, 1, 1], [], []>} : vector<128x128xbf16>, vector<128x128xbf16>, vector<128x128xf32> -> vector<128x128xf32>
      %c0_14 = arith.constant 0 : index
      %c0_15 = arith.constant 0 : index
      %16 = vector.load %arg6[%c0_14, %c0_15] : memref<1x128xf32, #tpu.memory_space<vmem>>, vector<1x128xf32>
      %17 = vector.broadcast %16 : vector<1x128xf32> to vector<128x128xf32>
      %18 = arith.addf %15, %17 : vector<128x128xf32>
      %c0_16 = arith.constant 0 : index
      %c0_17 = arith.constant 0 : index
      %19 = vector.load %arg4[%c0_16, %c0_17] : memref<128x128xbf16, #tpu.memory_space<vmem>>, vector<128x128xbf16>
      %c0_18 = arith.constant 0 : index
      %c0_19 = arith.constant 0 : index
      %20 = vector.load %arg7[%c0_18, %c0_19] : memref<128x128xbf16, #tpu.memory_space<vmem>>, vector<128x128xbf16>
      %cst_20 = arith.constant dense<0.000000e+00> : vector<128x128xf32>
      %21 = tpu.matmul %19, %20, %cst_20 {dimension_numbers = #tpu.dot_dimension_numbers<[1], [0], [0], [1], [0, 0, 1, 1], [], []>} : vector<128x128xbf16>, vector<128x128xbf16>, vector<128x128xf32> -> vector<128x128xf32>
      %22 = arith.addf %18, %21 : vector<128x128xf32>
      %cst_21 = arith.constant 0.000000e+00 : f32
      %23 = vector.broadcast %cst_21 : f32 to vector<128x128xf32>
      %24 = arith.maximumf %22, %23 : vector<128x128xf32>
      %25 = arith.truncf %24 : vector<128x128xf32> to vector<128x128xbf16>
      %c0_22 = arith.constant 0 : index
      %c0_23 = arith.constant 0 : index
      %26 = vector.load %arg8[%c0_22, %c0_23] : memref<128x128xbf16, #tpu.memory_space<vmem>>, vector<128x128xbf16>
      tpu.vector_store %arg8[%c0_22, %c0_23], %25 {strides = array<i32>} : memref<128x128xbf16, #tpu.memory_space<vmem>>, vector<128x128xbf16>,
    } else {
    }
    return
  }
  func.func @transform_0(%arg0: i32, %arg1: i32) -> (i32, i32) {
    %c0_i32 = arith.constant 0 : i32
    return %arg0, %arg1 : i32, i32
  }
  func.func @transform_1(%arg0: i32, %arg1: i32) -> (i32, i32) {
    %c0_i32 = arith.constant 0 : i32
    %c0_i32_0 = arith.constant 0 : i32
    return %arg1, %c0_i32 : i32, i32
  }
  func.func @transform_2(%arg0: i32, %arg1: i32) -> (i32, i32) {
    %c0_i32 = arith.constant 0 : i32
    %c0_i32_0 = arith.constant 0 : i32
    return %arg0, %c0_i32 : i32, i32
  }
  func.func @transform_3(%arg0: i32, %arg1: i32) -> (i32, i32) {
    %c0_i32 = arith.constant 0 : i32
    %c0_i32_0 = arith.constant 0 : i32
    %c0_i32_1 = arith.constant 0 : i32
    return %c0_i32, %c0_i32_0 : i32, i32
  }
  func.func @transform_4(%arg0: i32, %arg1: i32) -> (i32, i32) {
    %c0_i32 = arith.constant 0 : i32
    %c0_i32_0 = arith.constant 0 : i32
    %c0_i32_1 = arith.constant 0 : i32
    return %c0_i32, %c0_i32_0 : i32, i32
  }
  func.func @transform_5(%arg0: i32, %arg1: i32) -> (i32, i32) {
    %c0_i32 = arith.constant 0 : i32
    %c0_i32_0 = arith.constant 0 : i32
    %c0_i32_1 = arith.constant 0 : i32
    return %c0_i32, %c0_i32_0 : i32, i32
  }
  func.func @transform_6(%arg0: i32, %arg1: i32) -> (i32, i32) {
    %c0_i32 = arith.constant 0 : i32
    %c0_i32_0 = arith.constant 0 : i32
    return %arg0, %c0_i32 : i32, i32
  }
}

</mosaic_0001>

<bundles_post_ra>
// kernel: tpu_custom_call.1
= control target key start
LH: loop header
LB: loop body
LE: loop exit
PB: predicated region body
PF: predicated region fallthrough
CT: control target
= control target key end

     0   :  { %s2431_s0 = inlined_call_operand.hbm [shape: bf16[384,384], index: 0, kind: input, shape index: {}]   ;;  %s2432_s1 = inlined_call_operand.hbm [shape: bf16[384,128], index: 1, kind: input, shape index: {}]   ;;  %s2433_s2 = inlined_call_operand.hbm [shape: bf16[384,128], index: 2, kind: input, shape index: {}]   ;;  %s2434_s3 = inlined_call_operand.hbm [shape: bf16[128,128], index: 3, kind: input, shape index: {}]   ;;  %s2435_s4 = inlined_call_operand.vmem [shape: f32[1,128], index: 4, kind: input, shape index: {}]   ;;  %s2436_s5 = inlined_call_operand.hbm [shape: bf16[128,128], index: 5, kind: input, shape index: {}]   ;;  %s2437_s6 = inlined_call_operand.hbm [shape: bf16[384,128], index: 6, kind: output, shape index: {}]  }
   0x1   :  { %2447 = sst [smem:[#allocation26_spill]] %s2431_s0 }
   0x2   :  { %2448 = sst [smem:[#allocation27_spill]] %s2432_s1 }
   0x3   :  { %2449 = sst [smem:[#allocation28_spill]] %s2434_s3 }
   0x4   :  { %2450 = sst [smem:[#allocation29_spill]] %s2435_s4 }
   0x5   :  { %2451 = sst [smem:[#allocation30_spill]] %s2436_s5 }
   0x6   :  { %2452 = sst [smem:[#allocation31_spill]] %s2437_s6 }
   0x7   :  { %11 = vsyncpa [#allocation4], 0 }
   0x8   :  { %13 = vsyncpa [#allocation4 + $0x1], 0 }
   0x9   :  { %14 = vsyncpa [#allocation7], 0 }
   0xa   :  { %16 = vsyncpa [#allocation7 + $0x1], 0 }
   0xb   :  { %17 = vsyncpa [#allocation10], 0 }
   0xc   :  { %18 = vsyncpa [#allocation5], 0 }
   0xd   :  { %20 = vsyncpa [#allocation5 + $0x1], 0  ;;  %s2039_s21 = smov 0   ;;  %s2041_s22 = smov 0  }
   0xe   :  { %s2043_s23 = smov 0   ;;  %s2045_s24 = smov 0  }
   0xf   :  { %s2047_s25 = smov 0   ;;  %s2049_s26 = smov 0  }
  0x10   :  { %s2051_s27 = smov 0   ;;  %s2053_s28 = smov 0  }
  0x11   :  { %s2055_s29 = smov 0   ;;  %s2057_s30 = smov 0  }
  0x12   :  { %s2059_s7 = smov 0   ;;  %s2061_s8 = smov 0  }
  0x13   :  { %s2063_s9 = smov 0   ;;  %s2065_s10 = smov 0  }
  0x14 LB: > { %2453 = sst [smem:[#allocation18_spill]] %s1958_s25  ;;  %s2110_s11 = sadd.s32 4294967295, %s1994_s10   ;;  %s1994_s10 = sphi %s2065_s10, %s26_s10   ;;  %s1990_s9 = sphi %s2063_s9, %s2501_s9   ;;  %s1986_s8 = sphi %s2061_s8, %s2500_s8   ;;  %s1982_s7 = sphi %s2059_s7, %s2499_s7   ;;  %s1978_s30 = sphi %s2057_s30, %s2487_s30   ;;  %s1974_s29 = sphi %s2055_s29, %s2498_s29   ;;  %s1970_s28 = sphi %s2053_s28, %s2497_s28   ;;  %s1966_s27 = sphi %s2051_s27, %s2496_s27   ;;  %s1962_s26 = sphi %s2049_s26, %s2495_s26   ;;  %s1958_s25 = sphi %s2047_s25, %s2494_s25   ;;  %s1954_s24 = sphi %s2045_s24, %s2484_s24   ;;  %s1950_s23 = sphi %s2043_s23, %s2493_s23   ;;  %s1946_s22 = sphi %s2041_s22, %s2492_s22   ;;  %s1942_s21 = sphi %s2039_s21, %s2491_s21  }
  0x15   : > { %2454 = sst [smem:[#allocation19_spill]] %s1978_s30  ;;  %p1203_p0 = scmp.ge.s32.totalorder %s1994_s10, 1 }
  0x16   : > { %2455 = sst [smem:[#allocation20_spill]] %s1982_s7  ;;  %p61_p1 = scmp.eq.s32.totalorder %s2110_s11, 0 }
  0x17   : > { %2456 = sst [smem:[#allocation21_spill]] %s1986_s8  ;;  %p199_p2 = scmp.eq.s32.totalorder %s2110_s11, 8 }
  0x18   : > { %p212_p3 = scmp.lt.s32.totalorder %s1994_s10, 10  ;;  %s2457_s3 = sld [smem:[#allocation28_spill]] }
  0x19   : > { %s1996_s16 = smov [#allocation9]   ;;  %s2438_s19 = smov 64  }
  0x1a   : > { %p2119_p4 = pnand %p1203_p0, %p212_p3  ;;  %s225_s17 = sshll.u32 %s1996_s16, 4  ;;  %s226_s17 = int_to_ptr.vmem [resolvable:$true] %s225_s17 }
  0x1b   : > { %s2440_s20 = smov 4   ;;  %s35_s12 = sadd.s32 1, %s1986_s8 }
  0x1c   : > { %p1538_p5 = pneg %p2119_p4  ;;  %s38_s13 = sadd.s32 1, %s1990_s9 }
  0x1d   : > { %p36_p7 = scmp.ge.s32.totalorder %s35_s12, 3  ;;  %p55_p8 = scmp.eq.s32.totalorder %s1994_s10, 0 }
  0x1e   : > { %s223_s14 = sshll.u32 %s2457_s3, 4  ;;  %p2127_p6 = pnand %p1538_p5, %p61_p1  ;;  %s224_s14 = int_to_ptr.hbm [resolvable:$true] %s223_s14 }
  0x1f   : > { %s73_s16 = sadd.s32 1, %s1962_s26  ;;  %p80_p9 = scmp.ne.s32.totalorder %s1962_s26, %s1958_s25 }
  0x20   : > { %1541 = dma.hbm_to_vmem [thread:$0]  (!%p2127_p6), %s224_s14, 1024, %s226_s17, [#allocation10], %s2438_s19, %s2438_s19, %s2440_s20  }
  0x21   : > { %s2503_s12 = smov (%p36_p7, %s35_s12), 0  ;;  %s2505_s13 = smov (!%p36_p7, %s38_s13), %s1990_s9 }
  0x22   : > { %2460 = sst [smem:[#allocation22_spill]] %s2503_s12  ;;  %s43_s3 = ssub.s32 %s1986_s8, %s2503_s12 }
  0x23   : > { %p2149_p10 = por %p80_p9, %p55_p8  ;;  %p40_p11 = scmp.ge.s32.totalorder %s2505_s13, 3 }
  0x24   : > { %p71_p12 = scmp.eq.s32.totalorder %s43_s3, 0  ;;  %p86_p13 = scmp.ne.s32.totalorder %s1958_s25, %s1954_s24 }
  0x25   : > { %p1561_p0 = scmp.lt.s32.totalorder %s1994_s10, 9  ;;  %s2507_s13 = smov (%p40_p11, %s2505_s13), 0 }
  0x26   : > { %2462 = sst [smem:[#allocation23_spill]] %s2507_s13  ;;  %s2163_s19 = ssub.s32 %s1990_s9, %s2507_s13 }
  0x27   : > { %s2159_s17 = scalar_select %p71_p12, %s1962_s26, %s73_s16  }
  0x28   : > { %p2167_p3 = por %p86_p13, %p61_p1  ;;  %s44_s12 = sor.u32 %s43_s3, %s2163_s19 }
  0x29   : > { %2463 = sst [smem:[#allocation24_spill]] %s2159_s17  ;;  %p97_p5 = scmp.eq.s32.totalorder %s2163_s19, 0 }
  0x2a   : > { %p2173_p7 = scmp.eq.s32.totalorder %s44_s12, 0  ;;  %s280_s6 = sand.u32 1, %s1994_s10  }
  0x2b   : > { %s282_s16 = sand.u32 1, %s1962_s26   ;;  %s1391_s7 = sshll.u32 %s1986_s8, 6 }
  0x2c   : > { %s1211_s17 = sshll.u32 %s282_s16, 6  ;;  %s2466_s1 = sld [smem:[#allocation27_spill]] }
  0x2d   : > { %s284_s3 = scalar_lea.vmem [#allocation6], %s1211_s17  ;;  %p1549_p9 = pnand %p1561_p0, %p2149_p10 }
  0x2e   : > { %s292_s12 = sshll.u32 %s284_s3, 4  ;;  %s2467_s5 = sld [smem:[#allocation30_spill]]  ;;  %s293_s12 = int_to_ptr.vmem [resolvable:$true] %s292_s12 }
  0x2f   : > { %s2190_s16 = scalar_lea.sflag [#allocation7], %s280_s6  ;;  %s2468_s3 = smov 4  }
  0x30   : > { %s47_s14 = sadd.s32 1, %s1974_s29  ;;  %p54_p10 = scmp.ne.s32.totalorder %s1974_s29, %s1970_s28 }
  0x31   : > { %s2205_s4 = scalar_select %p2173_p7, %s1974_s29, %s47_s14  }
  0x32   : > { %s289_s30 = scalar_lea.hbm %s2466_s1, %s1391_s7  ;;  %s2469_s1 = smov 64  }
  0x33   : > { %s290_s25 = sshll.u32 %s289_s30, 4  ;;  %s1999_s30 = smov [#allocation11]   ;;  %s291_s25 = int_to_ptr.hbm [resolvable:$true] %s290_s25 }
  0x34   : > { %s240_s7 = sshll.u32 %s2467_s5, 4  ;;  %s242_s17 = sshll.u32 %s1999_s30, 4  ;;  %s241_s7 = int_to_ptr.hbm [resolvable:$true] %s240_s7  ;;  %s243_s17 = int_to_ptr.vmem [resolvable:$true] %s242_s17 }
  0x35   : > { %1551 = dma.hbm_to_vmem [thread:$0]  (!%p1549_p9), %s291_s25, 1024, %s293_s12, %s2190_s16, %s2469_s1, %s2469_s1, %s2468_s3  }
  0x36   : > { %1544 = dma.hbm_to_vmem [thread:$0]  (!%p2127_p6), %s241_s7, 1024, %s243_s17, [#allocation10], %s2469_s1, %s2469_s1, %s2468_s3  }
  0x37   : > { %2470 = sst [smem:[#allocation25_spill]] %s2205_s4  ;;  %p60_p11 = scmp.ne.s32.totalorder %s1970_s28, %s1966_s27 }
  0x38   : > { %s256_s6 = sand.u32 1, %s1974_s29   ;;  %s1521_s13 = smul.u32 48, %s1990_s9 }
  0x39   : > { %p56_p12 = por %p55_p8, %p54_p10  ;;  %p2217_p13 = por %p61_p1, %p60_p11 }
  0x3a   : > { %s1207_s18 = sshll.u32 %s256_s6, 6  ;;  %s265_s24 = sadd.s32 %s1986_s8, %s1521_s13 }
  0x3b   : > { %s1210_s12 = sshll.u32 %s265_s24, 2  ;;  %s260_s27 = scalar_lea.vmem [#allocation3], %s1207_s18 }
  0x3c   : > { %s270_s7 = sshll.u32 %s260_s27, 4  ;;  %s2472_s0 = sld [smem:[#allocation26_spill]]  ;;  %s271_s7 = int_to_ptr.vmem [resolvable:$true] %s270_s7 }
  0x3d   : > { %p1546_p6 = pnand %p1561_p0, %p56_p12  ;;  %s257_s13 = scalar_lea.sflag [#allocation4], %s256_s6 }
  0x3e   : > { %s2000_s8 = smov 192   ;;  %s1202_s18 = sadd.s32 4294967294, %s1994_s10  }
  0x3f   : > { %s99_s24 = sadd.s32 1, %s1950_s23  ;;  %p106_p7 = scmp.ne.s32.totalorder %s1950_s23, %s1946_s22 }
  0x40   : > { %s2236_s27 = scalar_select %p97_p5, %s1950_s23, %s99_s24  }
  0x41   : > { %p2240_p9 = por %p106_p7, %p55_p8  ;;  %p112_p10 = scmp.ne.s32.totalorder %s1946_s22, %s1942_s21 }
  0x42   : > { %s267_s14 = scalar_lea.hbm %s2472_s0, %s1210_s12  ;;  %p2248_p11 = por %p199_p2, %p106_p7 }
  0x43   : > { %s268_s5 = sshll.u32 %s267_s14, 4  ;;  %p205_p12 = scmp.eq.s32.totalorder %s1202_s18, 8  ;;  %s269_s5 = int_to_ptr.hbm [resolvable:$true] %s268_s5 }
  0x44   : > { %1548 = dma.hbm_to_vmem [thread:$0]  (!%p1546_p6), %s269_s5, 1024, %s271_s7, %s257_s13, %s2000_s8, %s2469_s1, %s2468_s3  }
  0x45   : > { %p2254_p6 = por %p112_p10, %p61_p1  ;;  %s304_s8 = sand.u32 1, %s1950_s23  }
  0x46   : > { %p2259_p5 = por %p205_p12, %p112_p10  ;;  %s1214_s7 = sshll.u32 %s304_s8, 6 }
  0x47   : > { %s1392_s30 = sshll.u32 %s1990_s9, 6  ;;  %s306_s24 = scalar_lea.vmem [#allocation8], %s1214_s7 }
  0x48   : > { %s311_s13 = scalar_lea.hbm %s2433_s2, %s1392_s30  ;;  %s314_s0 = sshll.u32 %s306_s24, 4  ;;  %s315_s0 = int_to_ptr.vmem [resolvable:$true] %s314_s0 }
  0x49   : > { %s312_s4 = sshll.u32 %s311_s13, 4  ;;  %p1552_p2 = pnand %p1561_p0, %p2240_p9  ;;  %s313_s4 = int_to_ptr.hbm [resolvable:$true] %s312_s4 }
  0x4a   : > { %326 = sbr.rel (%p2119_p4) target bundleno = 570 (0x23a), region = 44  ;;  %s328_s18 = sand.u32 (!%p2119_p4), 1, %s1970_s28  }
  0x4b   : > { %1554 = dma.hbm_to_vmem [thread:$0]  (!%p1552_p2), %s313_s4, 1024, %s315_s0, %s2190_s16, %s2469_s1, %s2469_s1, %s2468_s3  }
  0x4c   : > { %s1218_s8 = sshll.u32 (!%p2119_p4), %s328_s18, 6  ;;  %s329_s30 = scalar_lea.sflag (!%p2119_p4), [#allocation4], %s328_s18 }
  0x4d   : > { %s2278_s7 = scalar_lea.vmem (!%p2119_p4), [#allocation3], %s1218_s8 }
  0x4f   : > { %1921 = dma.done.wait (%p2217_p13), %s329_s30, 1024  }
  0x50   : > { %1923 = vsyncadd (%p2217_p13), %s329_s30, 4294966272  ;;  %s2477_s12 = sld [smem:[#allocation18_spill]]  ;;  %s338_s17 = sand.u32 1, %s2110_s11  }
  0x51   : > { %s339_s15 = scalar_lea.sflag [#allocation7], %s338_s17 }
  0x56   : > { %s340_s0 = sand.u32 1, %s2477_s12  }
  0x57   : > { %s1219_s1 = sshll.u32 %s340_s0, 6 }
  0x58   : > { %s2286_s16 = scalar_lea.vmem [#allocation6], %s1219_s1 }
  0x59   : > { %1925 = dma.done.wait (%p2167_p3), %s339_s15, 1024  }
  0x5a   : > { %1927 = vsyncadd (%p2167_p3), %s339_s15, 4294966272  ;;  %s350_s3 = sand.u32 1, %s1946_s22  }
  0x5b   : > { %s1220_s4 = sshll.u32 %s350_s3, 6 }
  0x5c   : > { %s2295_s25 = scalar_lea.vmem [#allocation8], %s1220_s4 }
  0x5d   : > { %1929 = dma.done.wait (%p2254_p6), %s339_s15, 1024  }
  0x5e   : > { %1931 = vsyncadd (%p2254_p6), %s339_s15, 4294966272 }
  0x5f   : > { %1933 = dma.done.wait (%p61_p1), [#allocation10], 2048  }
  0x60   : > { %1935 = vsyncadd (%p61_p1), [#allocation10], 4294965248  ;;  %s2305_s20 = scalar_lea.vmem [#allocation12], %s1220_s4  ;;  %s2478_s14 = sld [smem:[#allocation19_spill]] }
  0x66   : > { %p1224_p4 = scmp.ne.s32.totalorder %s2478_s14, 0 }
  0x68   : > { %409 = sbr.rel (%p1224_p4) target bundleno = 126 (0x7e), region = 68 }
  0x6d   : > { %v2001_v0 = vmov 0.0  }
  0x6e   : > { %410 = vst [vmem:[#allocation2 + $0x30] sm:$0xff] %v2001_v0 }
  0x6f   : > { %411 = vst [vmem:[#allocation2] sm:$0xff] %v2001_v0 }
  0x70   : > { %412 = vst [vmem:[#allocation2 + $0x58] sm:$0xff] %v2001_v0 }
  0x71   : > { %413 = vst [vmem:[#allocation2 + $0x18] sm:$0xff] %v2001_v0 }
  0x72   : > { %414 = vst [vmem:[#allocation2 + $0x50] sm:$0xff] %v2001_v0 }
  0x73   : > { %415 = vst [vmem:[#allocation2 + $0x68] sm:$0xff] %v2001_v0 }
  0x74   : > { %416 = vst [vmem:[#allocation2 + $0x8] sm:$0xff] %v2001_v0 }
  0x75   : > { %417 = vst [vmem:[#allocation2 + $0x48] sm:$0xff] %v2001_v0 }
  0x76   : > { %418 = vst [vmem:[#allocation2 + $0x40] sm:$0xff] %v2001_v0 }
  0x77   : > { %419 = vst [vmem:[#allocation2 + $0x20] sm:$0xff] %v2001_v0 }
  0x78   : > { %420 = vst [vmem:[#allocation2 + $0x10] sm:$0xff] %v2001_v0 }
  0x79   : > { %421 = vst [vmem:[#allocation2 + $0x38] sm:$0xff] %v2001_v0 }
  0x7a   : > { %422 = vst [vmem:[#allocation2 + $0x60] sm:$0xff] %v2001_v0 }
  0x7b   : > { %423 = vst [vmem:[#allocation2 + $0x70] sm:$0xff] %v2001_v0 }
  0x7c   : > { %424 = vst [vmem:[#allocation2 + $0x78] sm:$0xff] %v2001_v0 }
  0x7d   : > { %425 = vst [vmem:[#allocation2 + $0x28] sm:$0xff] %v2001_v0 }
  0x7e PF: > { %v1408_v1 = vld [vmem:[%s2286_s16 + $0x38] sm:$0xff]  ;;  %v1407_v2 = vld [vmem:[%s2286_s16 + $0x30] sm:$0xff]  ;;  %v1406_v3 = vld [vmem:[%s2286_s16 + $0x28] sm:$0xff]  ;;  %s2479_s11 = sld [smem:[#allocation19_spill]] }
  0x7f   : > { %570 = vmatpush.bf16.msra.mxu0 %v1408_v1  ;;  %1481 = vmatpush.bf16.msra.mxu1 %v1408_v1  ;;  %v1405_v4 = vld [vmem:[%s2286_s16 + $0x20] sm:$0xff]  ;;  %v1404_v5 = vld [vmem:[%s2286_s16 + $0x18] sm:$0xff]  ;;  %v1403_v6 = vld [vmem:[%s2286_s16 + $0x10] sm:$0xff] }
  0x80   : > { %1482 = vmatpush.bf16.msra.mxu2 %v1408_v1  ;;  %1483 = vmatpush.bf16.msra.mxu3 %v1408_v1  ;;  %v1402_v7 = vld [vmem:[%s2286_s16 + $0x8] sm:$0xff]  ;;  %v1401_v8 = vld [vmem:[%s2286_s16] sm:$0xff]  ;;  %v1395_v10 = vld [vmem:[%s2278_s7 + $0x10] sm:$0xff] }
  0x81   : > { %v1393_v9 = vld [vmem:[%s2278_s7] sm:$0xff]  ;;  %v1399_v12 = vld [vmem:[%s2278_s7 + $0x30] sm:$0xff]  ;;  %v1394_v13 = vld [vmem:[%s2278_s7 + $0x8] sm:$0xff] }
  0x82   : > { %v1397_v11 = vld [vmem:[%s2278_s7 + $0x20] sm:$0xff]  ;;  %v1396_v14 = vld [vmem:[%s2278_s7 + $0x18] sm:$0xff]  ;;  %v1398_v15 = vld [vmem:[%s2278_s7 + $0x28] sm:$0xff] }
  0x83   : > { %571 = vmatpush.bf16.msra.mxu0 %v1407_v2  ;;  %1484 = vmatpush.bf16.msra.mxu1 %v1407_v2  ;;  %v1400_v16 = vld [vmem:[%s2278_s7 + $0x38] sm:$0xff]  ;;  %v426_v17 = vld [vmem:[#allocation2 + $0x30] sm:$0xff]  ;;  %v434_v23 = vld [vmem:[#allocation2 + $0x40] sm:$0xff] }
  0x84   : > { %1485 = vmatpush.bf16.msra.mxu2 %v1407_v2  ;;  %1486 = vmatpush.bf16.msra.mxu3 %v1407_v2  ;;  %v430_v18 = vld [vmem:[#allocation2 + $0x50] sm:$0xff]  ;;  %v438_v24 = vld [vmem:[#allocation2 + $0x60] sm:$0xff]  ;;  %v431_v26 = vld [vmem:[#allocation2 + $0x68] sm:$0xff]  ;;  %p1289_p1 = scmp.ne.s32.totalorder %s2479_s11, 2 }
  0x85   : > { %v427_v25 = vld [vmem:[#allocation2] sm:$0xff]  ;;  %v439_v36 = vld [vmem:[#allocation2 + $0x70] sm:$0xff]  ;;  %v428_v37 = vld [vmem:[#allocation2 + $0x58] sm:$0xff]  ;;  %s2480_s24 = sld [smem:[#allocation29_spill]] (!%p1289_p1) }
  0x86   : > { %v435_v35 = vld [vmem:[#allocation2 + $0x20] sm:$0xff]  ;;  %v432_v38 = vld [vmem:[#allocation2 + $0x8] sm:$0xff]  ;;  %v436_v47 = vld [vmem:[#allocation2 + $0x10] sm:$0xff] }
  0x87   : > { %572 = vmatpush.bf16.msra.mxu0 %v1406_v3  ;;  %1487 = vmatpush.bf16.msra.mxu1 %v1406_v3  ;;  %v440_v48 = vld [vmem:[#allocation2 + $0x78] sm:$0xff]  ;;  %v433_v50 = vld [vmem:[#allocation2 + $0x48] sm:$0xff] }
  0x88   : > { %1488 = vmatpush.bf16.msra.mxu2 %v1406_v3  ;;  %1489 = vmatpush.bf16.msra.mxu3 %v1406_v3  ;;  %v429_v49 = vld [vmem:[#allocation2 + $0x18] sm:$0xff]  ;;  %v441_v60 = vld [vmem:[#allocation2 + $0x28] sm:$0xff] }
  0x89   : > { %v437_v59 = vld [vmem:[#allocation2 + $0x38] sm:$0xff] }
  0x8b   : > { %573 = vmatpush.bf16.msra.mxu0 %v1405_v4  ;;  %1490 = vmatpush.bf16.msra.mxu1 %v1405_v4 }
  0x8c   : > { %1491 = vmatpush.bf16.msra.mxu2 %v1405_v4  ;;  %1492 = vmatpush.bf16.msra.mxu3 %v1405_v4 }
  0x8f   : > { %574 = vmatpush.bf16.msra.mxu0 %v1404_v5  ;;  %1493 = vmatpush.bf16.msra.mxu1 %v1404_v5 }
  0x90   : > { %1494 = vmatpush.bf16.msra.mxu2 %v1404_v5  ;;  %1495 = vmatpush.bf16.msra.mxu3 %v1404_v5 }
  0x93   : > { %575 = vmatpush.bf16.msra.mxu0 %v1403_v6  ;;  %1496 = vmatpush.bf16.msra.mxu1 %v1403_v6 }
  0x94   : > { %1497 = vmatpush.bf16.msra.mxu2 %v1403_v6  ;;  %1498 = vmatpush.bf16.msra.mxu3 %v1403_v6 }
  0x97   : > { %576 = vmatpush.bf16.msra.mxu0 %v1402_v7  ;;  %1499 = vmatpush.bf16.msra.mxu1 %v1402_v7 }
  0x98   : > { %1500 = vmatpush.bf16.msra.mxu2 %v1402_v7  ;;  %1501 = vmatpush.bf16.msra.mxu3 %v1402_v7 }
  0x9b   : > { %577 = vmatpush.bf16.msra.mxu0 %v1401_v8  ;;  %1502 = vmatpush.bf16.msra.mxu1 %v1401_v8 }
  0x9c   : > { %1503 = vmatpush.bf16.msra.mxu2 %v1401_v8  ;;  %1504 = vmatpush.bf16.msra.mxu3 %v1401_v8 }
  0x9e   : > { %578 = vmatmul.bf16.vlgmr.msra.gmra.mxu0 %v1393_v9  ;;  %588 = vmatmul.bf16.vlgmr.msra.gmra.mxu1 %v1395_v10 }
  0x9f   : > { %598 = vmatmul.bf16.vlgmr.msra.gmra.mxu2 %v1397_v11  ;;  %608 = vmatmul.bf16.vlgmr.msra.gmra.mxu3 %v1399_v12 }
  0xae   : > { %583 = vmatmul.bf16.gmra.mxu0 %v1394_v13  ;;  %593 = vmatmul.bf16.gmra.mxu1 %v1396_v14 }
  0xaf   : > { %603 = vmatmul.bf16.gmra.mxu2 %v1398_v15  ;;  %613 = vmatmul.bf16.gmra.mxu3 %v1400_v16 }
 0x11b   : > { %v579_v19 = vpop.f32.mrf.mxu0  ;;  %v589_v20 = vpop.f32.mrf.mxu1 }
 0x11c   : > { %v619_v21 = vadd.f32 %v579_v19, %v426_v17  ;;  %v623_v22 = vadd.f32 %v589_v20, %v430_v18 }
 0x11e   : > { %635 = vst [vmem:[#allocation2 + $0x30] sm:$0xff] %v619_v21 }
 0x11f   : > { %639 = vst [vmem:[#allocation2 + $0x50] sm:$0xff] %v623_v22 }
 0x122   : > { %v599_v27 = vpop.f32.mrf.mxu2  ;;  %v609_v28 = vpop.f32.mrf.mxu3 }
 0x123   : > { %v627_v29 = vadd.f32 %v599_v27, %v434_v23  ;;  %v631_v30 = vadd.f32 %v609_v28, %v438_v24  ;;  %v581_v31 = vpop.f32.mrf.mxu0  ;;  %v591_v32 = vpop.f32.mrf.mxu1 }
 0x124   : > { %v620_v33 = vadd.f32 %v581_v31, %v427_v25  ;;  %v624_v34 = vadd.f32 %v591_v32, %v431_v26 }
 0x125   : > { %643 = vst [vmem:[#allocation2 + $0x40] sm:$0xff] %v627_v29 }
 0x126   : > { %647 = vst [vmem:[#allocation2 + $0x60] sm:$0xff] %v631_v30 }
 0x127   : > { %636 = vst [vmem:[#allocation2] sm:$0xff] %v620_v33 }
 0x128   : > { %640 = vst [vmem:[#allocation2 + $0x68] sm:$0xff] %v624_v34 }
 0x12a   : > { %v601_v39 = vpop.f32.mrf.mxu2  ;;  %v611_v40 = vpop.f32.mrf.mxu3 }
 0x12b   : > { %v628_v41 = vadd.f32 %v601_v39, %v435_v35  ;;  %v632_v42 = vadd.f32 %v611_v40, %v439_v36  ;;  %v584_v43 = vpop.f32.mrf.mxu0  ;;  %v594_v44 = vpop.f32.mrf.mxu1 }
 0x12c   : > { %v621_v45 = vadd.f32 %v584_v43, %v428_v37  ;;  %v625_v46 = vadd.f32 %v594_v44, %v432_v38 }
 0x12d   : > { %644 = vst [vmem:[#allocation2 + $0x20] sm:$0xff] %v628_v41 }
 0x12e   : > { %648 = vst [vmem:[#allocation2 + $0x70] sm:$0xff] %v632_v42 }
 0x12f   : > { %637 = vst [vmem:[#allocation2 + $0x58] sm:$0xff] %v621_v45 }
 0x130   : > { %641 = vst [vmem:[#allocation2 + $0x8] sm:$0xff] %v625_v46 }
 0x132   : > { %v604_v51 = vpop.f32.mrf.mxu2  ;;  %v614_v52 = vpop.f32.mrf.mxu3 }
 0x133   : > { %v629_v53 = vadd.f32 %v604_v51, %v436_v47  ;;  %v633_v54 = vadd.f32 %v614_v52, %v440_v48  ;;  %v586_v55 = vpop.f32.mrf.mxu0  ;;  %v596_v56 = vpop.f32.mrf.mxu1 }
 0x134   : > { %v622_v57 = vadd.f32 %v586_v55, %v429_v49  ;;  %v626_v58 = vadd.f32 %v596_v56, %v433_v50 }
 0x135   : > { %645 = vst [vmem:[#allocation2 + $0x10] sm:$0xff] %v629_v53 }
 0x136   : > { %649 = vst [vmem:[#allocation2 + $0x78] sm:$0xff] %v633_v54 }
 0x137   : > { %638 = vst [vmem:[#allocation2 + $0x18] sm:$0xff] %v622_v57 }
 0x138   : > { %642 = vst [vmem:[#allocation2 + $0x48] sm:$0xff] %v626_v58 }
 0x13a   : > { %v606_v61 = vpop.f32.mrf.mxu2  ;;  %v616_v62 = vpop.f32.mrf.mxu3  ;;  %654 = sbr.rel (%p1289_p1) target bundleno = 548 (0x224), region = 72 }
 0x13b   : > { %v630_v63 = vadd.f32 %v606_v61, %v437_v59  ;;  %v634_v0 = vadd.f32 %v616_v62, %v441_v60 }
 0x13d   : > { %646 = vst [vmem:[#allocation2 + $0x38] sm:$0xff] %v630_v63 }
 0x13e   : > { %650 = vst [vmem:[#allocation2 + $0x28] sm:$0xff] %v634_v0 }
 0x13f   : > { %v1416_v1 = vld [vmem:[#allocation9 + $0x38] sm:$0xff]  ;;  %v1415_v3 = vld [vmem:[#allocation9 + $0x30] sm:$0xff]  ;;  %v1414_v5 = vld [vmem:[#allocation9 + $0x28] sm:$0xff] }
 0x140   : > { %v1432_v2 = vld [vmem:[#allocation11 + $0x38] sm:$0xff]  ;;  %747 = vmatpush.bf16.msra.mxu0 %v1416_v1  ;;  %1505 = vmatpush.bf16.msra.mxu2 %v1416_v1  ;;  %v1431_v4 = vld [vmem:[#allocation11 + $0x30] sm:$0xff]  ;;  %v1430_v6 = vld [vmem:[#allocation11 + $0x28] sm:$0xff] }
 0x141   : > { %924 = vmatpush.bf16.msra.mxu1 %v1432_v2  ;;  %1513 = vmatpush.bf16.msra.mxu3 %v1432_v2  ;;  %v1413_v7 = vld [vmem:[#allocation9 + $0x20] sm:$0xff]  ;;  %v1412_v9 = vld [vmem:[#allocation9 + $0x18] sm:$0xff]  ;;  %v1411_v11 = vld [vmem:[#allocation9 + $0x10] sm:$0xff] }
 0x142   : > { %v1429_v8 = vld [vmem:[#allocation11 + $0x20] sm:$0xff]  ;;  %v1428_v10 = vld [vmem:[#allocation11 + $0x18] sm:$0xff]  ;;  %v1427_v12 = vld [vmem:[#allocation11 + $0x10] sm:$0xff] }
 0x143   : > { %v1410_v13 = vld [vmem:[#allocation9 + $0x8] sm:$0xff]  ;;  %v1409_v15 = vld [vmem:[#allocation9] sm:$0xff]  ;;  %v655_v16 = vld [vmem:[#allocation2 + $0x30] sm:$0xff] }
 0x144   : > { %748 = vmatpush.bf16.msra.mxu0 %v1415_v3  ;;  %1506 = vmatpush.bf16.msra.mxu2 %v1415_v3  ;;  %v1426_v14 = vld [vmem:[#allocation11 + $0x8] sm:$0xff]  ;;  %v656_v17 = vld [vmem:[#allocation2] sm:$0xff]  ;;  %v657_v25 = vld [vmem:[#allocation2 + $0x58] sm:$0xff] }
 0x145   : > { %925 = vmatpush.bf16.msra.mxu1 %v1431_v4  ;;  %1514 = vmatpush.bf16.msra.mxu3 %v1431_v4  ;;  %v663_v18 = vld [vmem:[#allocation2 + $0x40] sm:$0xff]  ;;  %v671_v21 = vpack.c.bf16 %v656_v17, %v655_v16  ;;  %v658_v26 = vld [vmem:[#allocation2 + $0x18] sm:$0xff]  ;;  %v665_v27 = vld [vmem:[#allocation2 + $0x10] sm:$0xff] }
 0x146   : > { %v664_v19 = vld [vmem:[#allocation2 + $0x20] sm:$0xff]  ;;  %v666_v28 = vld [vmem:[#allocation2 + $0x38] sm:$0xff]  ;;  %v672_v29 = vpack.c.bf16 %v658_v26, %v657_v25  ;;  %v1418_v31 = vld [vmem:[%s2295_s25 + $0x8] sm:$0xff] }
 0x147   : > { %v1425_v20 = vld [vmem:[#allocation11] sm:$0xff]  ;;  %v675_v22 = vpack.c.bf16 %v664_v19, %v663_v18  ;;  %v676_v30 = vpack.c.bf16 %v666_v28, %v665_v27  ;;  %v1422_v32 = vld [vmem:[%s2295_s25 + $0x28] sm:$0xff]  ;;  %v659_v33 = vld [vmem:[#allocation2 + $0x50] sm:$0xff] }
 0x148   : > { %749 = vmatpush.bf16.msra.mxu0 %v1414_v5  ;;  %1507 = vmatpush.bf16.msra.mxu2 %v1414_v5  ;;  %v1417_v23 = vld [vmem:[%s2295_s25] sm:$0xff]  ;;  %v660_v34 = vld [vmem:[#allocation2 + $0x68] sm:$0xff]  ;;  %v668_v36 = vld [vmem:[#allocation2 + $0x70] sm:$0xff] }
 0x149   : > { %926 = vmatpush.bf16.msra.mxu1 %v1430_v6  ;;  %1515 = vmatpush.bf16.msra.mxu3 %v1430_v6  ;;  %v1421_v24 = vld [vmem:[%s2295_s25 + $0x20] sm:$0xff]  ;;  %v673_v37 = vpack.c.bf16 %v660_v34, %v659_v33  ;;  %v1419_v39 = vld [vmem:[%s2295_s25 + $0x10] sm:$0xff]  ;;  %v661_v41 = vld [vmem:[#allocation2 + $0x8] sm:$0xff] }
 0x14a   : > { %v667_v35 = vld [vmem:[#allocation2 + $0x60] sm:$0xff]  ;;  %v1423_v40 = vld [vmem:[%s2295_s25 + $0x30] sm:$0xff]  ;;  %v662_v42 = vld [vmem:[#allocation2 + $0x48] sm:$0xff] }
 0x14b   : > { %v677_v38 = vpack.c.bf16 %v668_v36, %v667_v35  ;;  %v669_v43 = vld [vmem:[#allocation2 + $0x78] sm:$0xff]  ;;  %v670_v44 = vld [vmem:[#allocation2 + $0x28] sm:$0xff]  ;;  %v674_v45 = vpack.c.bf16 %v662_v42, %v661_v41  ;;  %v2336_v50 = vld [vmem:[%s2480_s24] ss:$0 sm:$0xff] }
 0x14c   : > { %750 = vmatpush.bf16.msra.mxu0 %v1413_v7  ;;  %1508 = vmatpush.bf16.msra.mxu2 %v1413_v7  ;;  %v678_v46 = vpack.c.bf16 %v670_v44, %v669_v43  ;;  %v1420_v47 = vld [vmem:[%s2295_s25 + $0x18] sm:$0xff] }
 0x14d   : > { %927 = vmatpush.bf16.msra.mxu1 %v1429_v8  ;;  %1516 = vmatpush.bf16.msra.mxu3 %v1429_v8  ;;  %v1424_v48 = vld [vmem:[%s2295_s25 + $0x38] sm:$0xff] }
 0x150   : > { %751 = vmatpush.bf16.msra.mxu0 %v1412_v9  ;;  %1509 = vmatpush.bf16.msra.mxu2 %v1412_v9 }
 0x151   : > { %928 = vmatpush.bf16.msra.mxu1 %v1428_v10  ;;  %1517 = vmatpush.bf16.msra.mxu3 %v1428_v10 }
 0x154   : > { %752 = vmatpush.bf16.msra.mxu0 %v1411_v11  ;;  %1510 = vmatpush.bf16.msra.mxu2 %v1411_v11 }
 0x155   : > { %929 = vmatpush.bf16.msra.mxu1 %v1427_v12  ;;  %1518 = vmatpush.bf16.msra.mxu3 %v1427_v12 }
 0x158   : > { %753 = vmatpush.bf16.msra.mxu0 %v1410_v13  ;;  %1511 = vmatpush.bf16.msra.mxu2 %v1410_v13 }
 0x159   : > { %930 = vmatpush.bf16.msra.mxu1 %v1426_v14  ;;  %1519 = vmatpush.bf16.msra.mxu3 %v1426_v14 }
 0x15c   : > { %754 = vmatpush.bf16.msra.mxu0 %v1409_v15  ;;  %1512 = vmatpush.bf16.msra.mxu2 %v1409_v15 }
 0x15d   : > { %931 = vmatpush.bf16.msra.mxu1 %v1425_v20  ;;  %1520 = vmatpush.bf16.msra.mxu3 %v1425_v20 }
 0x15f   : > { %755 = vmatmul.bf16.vlgmr.msra.gmra.mxu0 %v671_v21  ;;  %775 = vmatmul.bf16.vlgmr.msra.gmra.mxu2 %v675_v22 }
 0x160   : > { %932 = vmatmul.bf16.vlgmr.msra.gmra.mxu1 %v1417_v23  ;;  %952 = vmatmul.bf16.vlgmr.msra.gmra.mxu3 %v1421_v24 }
 0x16f   : > { %760 = vmatmul.bf16.gmra.mxu0 %v672_v29  ;;  %780 = vmatmul.bf16.gmra.mxu2 %v676_v30 }
 0x170   : > { %937 = vmatmul.bf16.gmra.mxu1 %v1418_v31  ;;  %957 = vmatmul.bf16.gmra.mxu3 %v1422_v32 }
 0x17f   : > { %765 = vmatmul.bf16.gmra.mxu0 %v673_v37  ;;  %785 = vmatmul.bf16.gmra.mxu2 %v677_v38 }
 0x180   : > { %942 = vmatmul.bf16.gmra.mxu1 %v1419_v39  ;;  %962 = vmatmul.bf16.gmra.mxu3 %v1423_v40 }
 0x18f   : > { %770 = vmatmul.bf16.gmra.mxu0 %v674_v45  ;;  %790 = vmatmul.bf16.gmra.mxu2 %v678_v46 }
 0x190   : > { %947 = vmatmul.bf16.gmra.mxu1 %v1420_v47  ;;  %967 = vmatmul.bf16.gmra.mxu3 %v1424_v48 }
 0x1dc   : > { %v756_v49 = vpop.f32.mrf.mxu0 }
 0x1dd   : > { %v933_v51 = vpop.f32.mrf.mxu1  ;;  %v757_v52 = vadd.f32 %v2336_v50, %v756_v49 }
 0x1df   : > { %v973_v56 = vadd.f32 %v933_v51, %v757_v52 }
 0x1e1   : > { %v989_v61 = vmax.f32 %v973_v56, 0.0 }
 0x1e2   : > { %v776_v53 = vpop.f32.mrf.mxu2 }
 0x1e3   : > { %v953_v54 = vpop.f32.mrf.mxu3  ;;  %v777_v59 = vadd.f32 %v2336_v50, %v776_v53 }
 0x1e4   : > { %v758_v55 = vpop.f32.mrf.mxu0 }
 0x1e5   : > { %v759_v57 = vadd.f32 %v2336_v50, %v758_v55  ;;  %v935_v58 = vpop.f32.mrf.mxu1  ;;  %v981_v0 = vadd.f32 %v953_v54, %v777_v59 }
 0x1e7   : > { %v974_v60 = vadd.f32 %v935_v58, %v759_v57  ;;  %v997_v7 = vmax.f32 %v981_v0, 0.0 }
 0x1e9   : > { %v990_v62 = vmax.f32 %v974_v60, 0.0 }
 0x1ea   : > { %v778_v63 = vpop.f32.mrf.mxu2 }
 0x1eb   : > { %v1437_v1 = vpack.c.bf16 %v990_v62, %v989_v61  ;;  %v779_v2 = vadd.f32 %v2336_v50, %v778_v63  ;;  %v955_v3 = vpop.f32.mrf.mxu3 }
 0x1ec   : > { %v761_v4 = vpop.f32.mrf.mxu0 }
 0x1ed   : > { %1438 = vst [vmem:[%s2305_s20] sm:$0xff] %v1437_v1   ;;  %v982_v5 = vadd.f32 %v955_v3, %v779_v2  ;;  %v938_v6 = vpop.f32.mrf.mxu1  ;;  %v762_v10 = vadd.f32 %v2336_v50, %v761_v4 }
 0x1ef   : > { %v998_v8 = vmax.f32 %v982_v5, 0.0  ;;  %v975_v14 = vadd.f32 %v938_v6, %v762_v10 }
 0x1f1   : > { %v1457_v9 = vpack.c.bf16 %v998_v8, %v997_v7  ;;  %v991_v19 = vmax.f32 %v975_v14, 0.0 }
 0x1f2   : > { %v781_v11 = vpop.f32.mrf.mxu2 }
 0x1f3   : > { %1477 = vst [vmem:[%s2305_s20 + $0x20] sm:$0xff] %v1457_v9   ;;  %v958_v12 = vpop.f32.mrf.mxu3  ;;  %v782_v17 = vadd.f32 %v2336_v50, %v781_v11 }
 0x1f4   : > { %v763_v13 = vpop.f32.mrf.mxu0 }
 0x1f5   : > { %v764_v15 = vadd.f32 %v2336_v50, %v763_v13  ;;  %v940_v16 = vpop.f32.mrf.mxu1  ;;  %v983_v22 = vadd.f32 %v958_v12, %v782_v17 }
 0x1f7   : > { %v976_v18 = vadd.f32 %v940_v16, %v764_v15  ;;  %v999_v29 = vmax.f32 %v983_v22, 0.0 }
 0x1f9   : > { %v992_v20 = vmax.f32 %v976_v18, 0.0 }
 0x1fa   : > { %v783_v21 = vpop.f32.mrf.mxu2 }
 0x1fb   : > { %v1442_v23 = vpack.c.bf16 %v992_v20, %v991_v19  ;;  %v784_v24 = vadd.f32 %v2336_v50, %v783_v21  ;;  %v960_v25 = vpop.f32.mrf.mxu3 }
 0x1fc   : > { %v766_v26 = vpop.f32.mrf.mxu0 }
 0x1fd   : > { %1474 = vst [vmem:[%s2305_s20 + $0x8] sm:$0xff] %v1442_v23   ;;  %v984_v27 = vadd.f32 %v960_v25, %v784_v24  ;;  %v943_v28 = vpop.f32.mrf.mxu1  ;;  %v767_v32 = vadd.f32 %v2336_v50, %v766_v26 }
 0x1ff   : > { %v1000_v30 = vmax.f32 %v984_v27, 0.0  ;;  %v977_v36 = vadd.f32 %v943_v28, %v767_v32 }
 0x201   : > { %v1462_v31 = vpack.c.bf16 %v1000_v30, %v999_v29  ;;  %v993_v41 = vmax.f32 %v977_v36, 0.0 }
 0x202   : > { %v786_v33 = vpop.f32.mrf.mxu2 }
 0x203   : > { %1478 = vst [vmem:[%s2305_s20 + $0x28] sm:$0xff] %v1462_v31   ;;  %v963_v34 = vpop.f32.mrf.mxu3  ;;  %v787_v39 = vadd.f32 %v2336_v50, %v786_v33 }
 0x204   : > { %v768_v35 = vpop.f32.mrf.mxu0 }
 0x205   : > { %v769_v37 = vadd.f32 %v2336_v50, %v768_v35  ;;  %v945_v38 = vpop.f32.mrf.mxu1  ;;  %v985_v44 = vadd.f32 %v963_v34, %v787_v39 }
 0x207   : > { %v978_v40 = vadd.f32 %v945_v38, %v769_v37  ;;  %v1001_v52 = vmax.f32 %v985_v44, 0.0 }
 0x209   : > { %v994_v42 = vmax.f32 %v978_v40, 0.0 }
 0x20a   : > { %v788_v43 = vpop.f32.mrf.mxu2 }
 0x20b   : > { %v1447_v45 = vpack.c.bf16 %v994_v42, %v993_v41  ;;  %v789_v46 = vadd.f32 %v2336_v50, %v788_v43  ;;  %v965_v47 = vpop.f32.mrf.mxu3 }
 0x20c   : > { %v771_v48 = vpop.f32.mrf.mxu0 }
 0x20d   : > { %1475 = vst [vmem:[%s2305_s20 + $0x10] sm:$0xff] %v1447_v45   ;;  %v986_v49 = vadd.f32 %v965_v47, %v789_v46  ;;  %v948_v51 = vpop.f32.mrf.mxu1  ;;  %v772_v55 = vadd.f32 %v2336_v50, %v771_v48 }
 0x20f   : > { %v1002_v53 = vmax.f32 %v986_v49, 0.0  ;;  %v979_v59 = vadd.f32 %v948_v51, %v772_v55 }
 0x211   : > { %v1467_v54 = vpack.c.bf16 %v1002_v53, %v1001_v52  ;;  %v995_v0 = vmax.f32 %v979_v59, 0.0 }
 0x212   : > { %v791_v56 = vpop.f32.mrf.mxu2 }
 0x213   : > { %1479 = vst [vmem:[%s2305_s20 + $0x30] sm:$0xff] %v1467_v54   ;;  %v968_v57 = vpop.f32.mrf.mxu3  ;;  %v792_v62 = vadd.f32 %v2336_v50, %v791_v56 }
 0x214   : > { %v773_v58 = vpop.f32.mrf.mxu0 }
 0x215   : > { %v774_v60 = vadd.f32 %v2336_v50, %v773_v58  ;;  %v950_v61 = vpop.f32.mrf.mxu1  ;;  %v987_v3 = vadd.f32 %v968_v57, %v792_v62 }
 0x217   : > { %v980_v63 = vadd.f32 %v950_v61, %v774_v60  ;;  %v1003_v8 = vmax.f32 %v987_v3, 0.0 }
 0x219   : > { %v996_v1 = vmax.f32 %v980_v63, 0.0 }
 0x21a   : > { %v793_v2 = vpop.f32.mrf.mxu2 }
 0x21b   : > { %v1452_v4 = vpack.c.bf16 %v996_v1, %v995_v0  ;;  %v794_v5 = vadd.f32 %v2336_v50, %v793_v2  ;;  %v970_v6 = vpop.f32.mrf.mxu3 }
 0x21d   : > { %1476 = vst [vmem:[%s2305_s20 + $0x18] sm:$0xff] %v1452_v4   ;;  %v988_v7 = vadd.f32 %v970_v6, %v794_v5 }
 0x21f   : > { %v1004_v9 = vmax.f32 %v988_v7, 0.0 }
 0x221   : > { %v1472_v10 = vpack.c.bf16 %v1004_v9, %v1003_v8 }
 0x223   : > { %1480 = vst [vmem:[%s2305_s20 + $0x38] sm:$0xff] %v1472_v10  }
 0x224 PF: > { %s2481_s18 = sld [smem:[#allocation20_spill]]  ;;  %s1050_s0 = sshll.u32 %s2305_s20, 4  ;;  %s1051_s0 = int_to_ptr.vmem [resolvable:$true] %s1050_s0 }
 0x225   : > { %s2482_s12 = sld [smem:[#allocation31_spill]]  ;;  %s1038_s15 = scalar_lea.sflag [#allocation5], %s350_s3 }
 0x22a   : > { %s1433_s8 = sshll.u32 %s2481_s18, 6 }
 0x22b   : > { %s1049_s17 = scalar_lea.hbm %s2482_s12, %s1433_s8  ;;  %s1856_s11 = scalar_lea.hbm %s2482_s12, 192 }
 0x22c   : > { %s1052_s1 = sshll.u32 %s1049_s17, 4  ;;  %s1053_s1 = int_to_ptr.hbm [resolvable:$true] %s1052_s1 }
 0x22d   : > { %s1850_s16 = sshra.s32 %s1053_s1, 4  ;;  %s1851_s16 = int_to_ptr.hbm [resolvable:$true] %s1850_s16 }
 0x22e   : > { %s1852_s4 = scalar_lea.hbm %s1851_s16, 64  ;;  %p1857_p13 = scmp.lt.s32.totalorder %s1851_s16, %s2482_s12 }
 0x22f   : > { %p1853_p8 = scmp.ne.s32.totalorder %s1851_s16, %s1852_s4  ;;  %p1858_p7 = scmp.lt.s32.totalorder %s1856_s11, %s1852_s4 }
 0x231   : > { %p1854_p0 = pnand %p1853_p8, %p2248_p11  ;;  %p1859_p9 = por %p1858_p7, %p1857_p13 }
 0x233   : > { %p1855_p3 = pneg %p1854_p0 }
 0x235   : > { %p1860_p10 = pnand %p1859_p9, %p1855_p3 }
 0x237   : > { %1863 = shalt.err (!%p1860_p10)
}
 0x238   : > { %s2002_s3 = smov 64   ;;  %s2003_s20 = smov 4  }
 0x239   : > { %1536 = dma.vmem_to_hbm [thread:$0]  (%p2248_p11), %s1051_s0, 1024, %s1053_s1, %s1038_s15, %s2002_s3, %s2002_s3, %s2003_s20  }
 0x23a PF: > { %p1564_p12 = scmp.ge.s32.totalorder %s1994_s10, 2  ;;  %s1067_s24 = sand.u32 1, %s1942_s21  }
 0x23b   : > { %s1068_s18 = scalar_lea.sflag [#allocation5], %s1067_s24 }
 0x23c   : > { %p1556_p6 = pnand %p1564_p12, %p2259_p5 }
 0x23e   : > { %p1557_p2 = pneg %p1556_p6 }
 0x240   : > { %1937 = dma.done.wait (%p1557_p2), %s1068_s18, 1024  }
 0x241   : > { %1939 = vsyncadd (%p1557_p2), %s1068_s18, 4294966272  ;;  %s26_s10 = sadd.s32 1, %s1994_s10   ;;  %s2484_s24 = sld [smem:[#allocation18_spill]] }
 0x242   : > { %p2384_p4 = scmp.ge.s32.totalorder %s26_s10, 11   ;;  %s2485_s6 = sld [smem:[#allocation24_spill]] }
 0x243   : > { %s2486_s19 = sld [smem:[#allocation25_spill]]  ;;  %s2491_s21 = smov %s1946_s22 }
 0x244   : > { %s2487_s30 = sld [smem:[#allocation21_spill]]  ;;  %s2492_s22 = smov %s1950_s23 }
 0x245   : > { %s2488_s17 = sld [smem:[#allocation22_spill]]  ;;  %s2493_s23 = smov %s2236_s27 }
 0x246   : > { %s2489_s0 = sld [smem:[#allocation23_spill]]  ;;  %s2494_s25 = smov %s1962_s26 }
 0x247   : > { %s2496_s27 = smov %s1970_s28  ;;  %s2497_s28 = smov %s1974_s29 }
 0x248   : > { %s2495_s26 = smov %s2485_s6  ;;  %s2499_s7 = smov %s1990_s9 }
 0x249   : > { %s2498_s29 = smov %s2486_s19  ;;  %25 = sbr.rel (!%p2384_p4) target bundleno = 20 (0x14), region = 129 }
 0x24b   : > { %s2500_s8 = smov %s2488_s17 }
 0x24c   : > { %s2501_s9 = smov %s2489_s0 }
 0x24e   :  { %1074 = vsyncpa [#allocation4], 1 }
 0x24f   :  { %1076 = vsyncpa [#allocation4 + $0x1], 1 }
 0x250   :  { %1077 = vsyncpa [#allocation7], 1 }
 0x251   :  { %1079 = vsyncpa [#allocation7 + $0x1], 1 }
 0x252   :  { %1080 = vsyncpa [#allocation10], 1 }
 0x253   :  { %1081 = vsyncpa [#allocation5], 1 }
 0x254   :  { %1083 = vsyncpa [#allocation5 + $0x1], 1 }

</bundles_post_ra>
